<compile_context>
chip_gen: v6e
topology: v6e:2x2x1
jax: 0.10.0
libtpu: 0.0.40
codegen_flags: <defaults>
</compile_context>

<pallas_src>
import jax
import jax.numpy as jnp
from jax import lax
from jax.experimental import pallas as pl
from jax.experimental.pallas import tpu as pltpu


def _round_up(x, m):
    return ((x + m - 1) // m) * m


def ppo_critic_kernel(x_ref, w1_ref, b1_ref, w2_ref, b2_ref, w3_ref, b3_ref,
                      out_ref):
    """One batch tile.

    x_ref  : (TB, S)  state tile in natural layout (streamed from HBM)
    w1_ref : (H, S)   fc1 weight, PyTorch (out, in) layout, VMEM resident
    b1_ref : (H, 1)   resident
    w2_ref : (H, H)   resident (f32, or bf16 when activations run in bf16)
    b2_ref : (H, 1)   resident
    w3_ref : (H, 1)   fc3 weight as a column, resident
    b3_ref : (1,)     scalar in SMEM
    out_ref: (1, TB)  value^T tile (batch on lanes -> unmasked lane-dense stores)
    """
    act_dt = w2_ref.dtype  # f32, or bf16 on chips with a bf16 EUP path

    x = x_ref[...].astype(jnp.float32)                          # (TB, S)

    # fc1: contract S of W1 with S of x (flash-attention q @ k^T pattern);
    # result is (H, TB) with the batch on the lane axis, so no host transpose
    # of the state and no lane-sparse stores downstream.
    pre1 = lax.dot_general(
        w1_ref[...], x, (((1,), (1,)), ((), ())),
        preferred_element_type=jnp.float32) + b1_ref[...]       # (H, TB)
    h1 = jnp.tanh(pre1.astype(act_dt))                          # (H, TB)

    # fc2: plain (H, H) x (H, TB) matmul; bf16 operands when act_dt == bf16,
    # f32 accumulation either way.
    pre2 = jnp.dot(w2_ref[...], h1,
                   preferred_element_type=jnp.float32) + b2_ref[...]
    h2 = jnp.tanh(pre2.astype(act_dt))                          # (H, TB)

    # fc3 (H -> 1): VPU multiply + sublane reduction; keeps the MXU free.
    v = jnp.sum(h2.astype(jnp.float32) * w3_ref[...],
                axis=0, keepdims=True) + b3_ref[0]              # (1, TB)
    out_ref[...] = v.astype(out_ref.dtype)


def _pick_act_dtype():
    """bf16 activations on chips whose EUP/MXU handle bf16 (v6e/v7x), else f32."""
    try:
        kind = jax.devices()[0].device_kind.lower()
    except Exception:
        return jnp.float32
    if any(tag in kind for tag in ("v6", "v7", "7x")):
        return jnp.bfloat16
    return jnp.float32


def _pick_block_batch(B, block_batch):
    """Batch-tile size: large tiles to amortize per-step overhead, but at
    least two tiles for medium batches so v7x's two TensorCores both work."""
    tb_cap = min(_round_up(max(block_batch, 128), 128), 8192)
    if B <= 128:
        return 128
    if B <= 2 * tb_cap:
        return _round_up(pl.cdiv(B, 2), 128)   # exactly two tiles
    return tb_cap


def ppo_critic_forward(state, w1, b1, w2, b2, w3, b3, *,
                       block_batch=4096, act_dtype=None):
    """state: (B, state_dim).  Weights in PyTorch layout:
       w1 (H,S), b1 (H,), w2 (H,H), b2 (H,), w3 (1,H), b3 (1,).
       Returns value (B, 1) == fc3(tanh(fc2(tanh(fc1(state))))).

       act_dtype: activation/tanh dtype; None -> bf16 on v6e/v7x, f32 else.
       Tip: to halve the streamed HBM bytes (biggest win on v5e), produce
       `state` in bf16 upstream -- the kernel upcasts after load; no host-side
       cast pass is ever inserted here."""
    B, S = state.shape
    H = w1.shape[0]

    if act_dtype is None:
        act_dtype = _pick_act_dtype()

    TB = _pick_block_batch(B, block_batch)
    num_tiles = pl.cdiv(B, TB)
    B_out = num_tiles * TB          # output allocation (lane-dense blocks)

    # Stream the state as-is.  Only a tiny batch (B < TB, i.e. B < 128-ish)
    # gets padded; for B >= TB the ragged last block is handled by Pallas
    # (OOB tail rows become garbage lanes that never mix with valid lanes and
    # are sliced off below) -- no host-side copy of the input.
    x = state
    if B < TB:
        x = jnp.pad(state, ((0, TB - B), (0, 0)))

    # Parameter plumbing: free reshapes of contiguous vectors plus one tiny
    # (H, H) cast when running bf16 activations.
    w1k = w1.astype(jnp.float32)
    w2k = w2.astype(act_dtype)
    b1k = b1.astype(jnp.float32).reshape(H, 1)
    b2k = b2.astype(jnp.float32).reshape(H, 1)
    w3k = w3.astype(jnp.float32).reshape(H, 1)   # (1, H) -> column (bitcast)
    b3k = b3.astype(jnp.float32).reshape(1)

    cost = pl.CostEstimate(
        flops=2 * B_out * (S * H + H * H + H),
        transcendentals=2 * B_out * H,
        bytes_accessed=(x.size * x.dtype.itemsize + B_out * 4
                        + 4 * (w1.size + w2.size + w3.size
                               + b1.size + b2.size + 1)),
    )

    grid_spec = pltpu.PrefetchScalarGridSpec(
        num_scalar_prefetch=0,
        grid=(num_tiles,),
        in_specs=[
            pl.BlockSpec((TB, S), lambda i: (i, 0)),            # state stream
            pl.BlockSpec((H, S), lambda i: (0, 0)),             # W1 (resident)
            pl.BlockSpec((H, 1), lambda i: (0, 0)),             # b1 (resident)
            pl.BlockSpec((H, H), lambda i: (0, 0)),             # W2 (resident)
            pl.BlockSpec((H, 1), lambda i: (0, 0)),             # b2 (resident)
            pl.BlockSpec((H, 1), lambda i: (0, 0)),             # w3 (resident)
            pl.BlockSpec(memory_space=pltpu.MemorySpace.SMEM),  # b3 scalar
        ],
        out_specs=pl.BlockSpec((1, TB), lambda i: (0, i)),      # value^T stream
    )

    outT = pl.pallas_call(
        ppo_critic_kernel,
        out_shape=jax.ShapeDtypeStruct((1, B_out), jnp.float32),
        grid_spec=grid_spec,
        compiler_params=pltpu.CompilerParams(
            # Batch tiles are independent -> shard across v7x's two TCs.
            dimension_semantics=("parallel",)),
        cost_estimate=cost,
    )(x, w1k, b1k, w2k, b2k, w3k, b3k)

    # Slice off garbage tail lanes (ragged last block) before anything else.
    return outT[0, :B].reshape(B, 1)


def orthogonal(key, rows, cols, dtype=jnp.float32):
    """Semi-orthogonal init matching nn.init.orthogonal_ semantics."""
    big, small = max(rows, cols), min(rows, cols)
    a = jax.random.normal(key, (big, small), dtype=jnp.float32)
    q, r = jnp.linalg.qr(a)                 # q: (big, small), orthonormal cols
    q = q * jnp.sign(jnp.diag(r))           # unique sign correction, as torch
    if rows < cols:
        q = q.T
    return q.astype(dtype)


def make_params(key, state_dim, hidden_dim):
    """PyTorch-layout parameters: weight (out, in), bias (out,); zero biases."""
    k1, k2, k3 = jax.random.split(key, 3)
    w1 = orthogonal(k1, hidden_dim, state_dim)      # (H, S)
    w2 = orthogonal(k2, hidden_dim, hidden_dim)     # (H, H)
    w3 = orthogonal(k3, 1, hidden_dim)              # (1, H)
    b1 = jnp.zeros((hidden_dim,), jnp.float32)
    b2 = jnp.zeros((hidden_dim,), jnp.float32)
    b3 = jnp.zeros((1,), jnp.float32)
    return w1, b1, w2, b2, w3, b3


if __name__ == "__main__":
    state_dim = 16
    hidden_dim = 32
    batch = 8

    key = jax.random.PRNGKey(0)
    k_params, k_state = jax.random.split(key)

    params = make_params(k_params, state_dim, hidden_dim)
    state = jax.random.normal(k_state, (batch, state_dim), dtype=jnp.float32)

    act_dtype = _pick_act_dtype()   # bf16 on v6e/v7x, f32 on v5e/older
    value = ppo_critic_forward(state, *params, act_dtype=act_dtype)
    value = jax.block_until_ready(value)

    # Pure-JAX f32 reference of the same forward (PyTorch Linear: x @ W.T + b).
    w1, b1, w2, b2, w3, b3 = params
    ref = jnp.tanh(state @ w1.T + b1)
    ref = jnp.tanh(ref @ w2.T + b2)
    ref = ref @ w3.T + b3

    assert value.shape == (batch, 1)
    tol = 5e-2 if act_dtype == jnp.bfloat16 else 1e-4
    assert jnp.allclose(value, ref, atol=tol, rtol=tol), (
        float(jnp.max(jnp.abs(value - ref))))

    print("KERNEL_OK")
</pallas_src>

<mosaic_0001>
module attributes {stable_mosaic.version = 11 : i64} {
  func.func @ppo_critic_kernel(%arg0: i32, %arg1: memref<128x16xf32, #tpu.memory_space<vmem>>, %arg2: memref<32x16xf32, #tpu.memory_space<vmem>>, %arg3: memref<32x1xf32, #tpu.memory_space<vmem>>, %arg4: memref<32x32xf32, #tpu.memory_space<vmem>>, %arg5: memref<32x1xf32, #tpu.memory_space<vmem>>, %arg6: memref<32x1xf32, #tpu.memory_space<vmem>>, %arg7: memref<1xf32, #tpu.memory_space<smem>>, %arg8: memref<1x128xf32, #tpu.memory_space<vmem>>) attributes {dimension_semantics = [#tpu.dimension_semantics<parallel>], iteration_bounds = array<i64: 1>, scalar_prefetch = 0 : i64, scratch_operands = 0 : i64, tpu.core_type = #tpu.core_type<tc>, window_params = [{transform_indices = @transform_0, window_bounds = array<i64: 128, 16>}, {pipeline_mode = #tpu.pipeline_mode<synchronous>, transform_indices = @transform_1, window_bounds = array<i64: 32, 16>}, {pipeline_mode = #tpu.pipeline_mode<synchronous>, transform_indices = @transform_2, window_bounds = array<i64: 32, 1>}, {pipeline_mode = #tpu.pipeline_mode<synchronous>, transform_indices = @transform_3, window_bounds = array<i64: 32, 32>}, {pipeline_mode = #tpu.pipeline_mode<synchronous>, transform_indices = @transform_4, window_bounds = array<i64: 32, 1>}, {pipeline_mode = #tpu.pipeline_mode<synchronous>, transform_indices = @transform_5, window_bounds = array<i64: 32, 1>}, {transform_indices = @transform_6, window_bounds = array<i64: 1>}, {transform_indices = @transform_7, window_bounds = array<i64: 1, 128>}]} {
    %c0 = arith.constant 0 : index
    %c0_0 = arith.constant 0 : index
    %0 = vector.load %arg1[%c0, %c0_0] : memref<128x16xf32, #tpu.memory_space<vmem>>, vector<128x16xf32>
    %c0_1 = arith.constant 0 : index
    %c0_2 = arith.constant 0 : index
    %1 = vector.load %arg2[%c0_1, %c0_2] : memref<32x16xf32, #tpu.memory_space<vmem>>, vector<32x16xf32>
    %cst = arith.constant dense<0.000000e+00> : vector<32x128xf32>
    %2 = tpu.matmul %1, %0, %cst {dimension_numbers = #tpu.dot_dimension_numbers<[1], [1], [0], [0], [0, 0, 1, 0], [], []>} : vector<32x16xf32>, vector<128x16xf32>, vector<32x128xf32> -> vector<32x128xf32>
    %c0_3 = arith.constant 0 : index
    %c0_4 = arith.constant 0 : index
    %3 = vector.load %arg3[%c0_3, %c0_4] : memref<32x1xf32, #tpu.memory_space<vmem>>, vector<32x1xf32>
    %4 = vector.broadcast %3 : vector<32x1xf32> to vector<32x128xf32>
    %5 = arith.addf %2, %4 : vector<32x128xf32>
    %6 = math.tanh %5 : vector<32x128xf32>
    %c0_5 = arith.constant 0 : index
    %c0_6 = arith.constant 0 : index
    %7 = vector.load %arg4[%c0_5, %c0_6] : memref<32x32xf32, #tpu.memory_space<vmem>>, vector<32x32xf32>
    %cst_7 = arith.constant dense<0.000000e+00> : vector<32x128xf32>
    %8 = tpu.matmul %7, %6, %cst_7 {dimension_numbers = #tpu.dot_dimension_numbers<[1], [0], [0], [1], [0, 0, 1, 1], [], []>} : vector<32x32xf32>, vector<32x128xf32>, vector<32x128xf32> -> vector<32x128xf32>
    %c0_8 = arith.constant 0 : index
    %c0_9 = arith.constant 0 : index
    %9 = vector.load %arg5[%c0_8, %c0_9] : memref<32x1xf32, #tpu.memory_space<vmem>>, vector<32x1xf32>
    %10 = vector.broadcast %9 : vector<32x1xf32> to vector<32x128xf32>
    %11 = arith.addf %8, %10 : vector<32x128xf32>
    %12 = math.tanh %11 : vector<32x128xf32>
    %c0_10 = arith.constant 0 : index
    %c0_11 = arith.constant 0 : index
    %13 = vector.load %arg6[%c0_10, %c0_11] : memref<32x1xf32, #tpu.memory_space<vmem>>, vector<32x1xf32>
    %14 = vector.broadcast %13 : vector<32x1xf32> to vector<32x128xf32>
    %15 = arith.mulf %12, %14 : vector<32x128xf32>
    %cst_12 = arith.constant dense<0.000000e+00> : vector<128xf32>
    %16 = vector.multi_reduction <add>, %15, %cst_12 [0] : vector<32x128xf32> to vector<128xf32>
    %17 = vector.shape_cast %16 : vector<128xf32> to vector<1x128xf32>
    %c0_13 = arith.constant 0 : index
    %18 = memref.load %arg7[%c0_13] : memref<1xf32, #tpu.memory_space<smem>>
    %19 = vector.broadcast %18 : f32 to vector<1x128xf32>
    %20 = arith.addf %17, %19 : vector<1x128xf32>
    %c0_14 = arith.constant 0 : index
    %c0_15 = arith.constant 0 : index
    %21 = vector.load %arg8[%c0_14, %c0_15] : memref<1x128xf32, #tpu.memory_space<vmem>>, vector<1x128xf32>
    tpu.vector_store %arg8[%c0_14, %c0_15], %20 {strides = array<i32>} : memref<1x128xf32, #tpu.memory_space<vmem>>, vector<1x128xf32>,
    return
  }
  func.func @transform_0(%arg0: i32) -> (i32, i32) {
    %c0_i32 = arith.constant 0 : i32
    %c0_i32_0 = arith.constant 0 : i32
    return %arg0, %c0_i32 : i32, i32
  }
  func.func @transform_1(%arg0: i32) -> (i32, i32) {
    %c0_i32 = arith.constant 0 : i32
    %c0_i32_0 = arith.constant 0 : i32
    %c0_i32_1 = arith.constant 0 : i32
    return %c0_i32, %c0_i32_0 : i32, i32
  }
  func.func @transform_2(%arg0: i32) -> (i32, i32) {
    %c0_i32 = arith.constant 0 : i32
    %c0_i32_0 = arith.constant 0 : i32
    %c0_i32_1 = arith.constant 0 : i32
    return %c0_i32, %c0_i32_0 : i32, i32
  }
  func.func @transform_3(%arg0: i32) -> (i32, i32) {
    %c0_i32 = arith.constant 0 : i32
    %c0_i32_0 = arith.constant 0 : i32
    %c0_i32_1 = arith.constant 0 : i32
    return %c0_i32, %c0_i32_0 : i32, i32
  }
  func.func @transform_4(%arg0: i32) -> (i32, i32) {
    %c0_i32 = arith.constant 0 : i32
    %c0_i32_0 = arith.constant 0 : i32
    %c0_i32_1 = arith.constant 0 : i32
    return %c0_i32, %c0_i32_0 : i32, i32
  }
  func.func @transform_5(%arg0: i32) -> (i32, i32) {
    %c0_i32 = arith.constant 0 : i32
    %c0_i32_0 = arith.constant 0 : i32
    %c0_i32_1 = arith.constant 0 : i32
    return %c0_i32, %c0_i32_0 : i32, i32
  }
  func.func @transform_6(%arg0: i32) -> i32 {
    %c0_i32 = arith.constant 0 : i32
    %c0_i32_0 = arith.constant 0 : i32
    return %c0_i32 : i32
  }
  func.func @transform_7(%arg0: i32) -> (i32, i32) {
    %c0_i32 = arith.constant 0 : i32
    %c0_i32_0 = arith.constant 0 : i32
    return %c0_i32, %arg0 : i32, i32
  }
}

</mosaic_0001>

<bundles_post_ra>
// kernel: tpu_custom_call.1
= control target key start
LH: loop header
LB: loop body
LE: loop exit
PB: predicated region body
PF: predicated region fallthrough
CT: control target
= control target key end

     0   :  { %vm72_vm0 = vcmask 130048   ;;  %v553_v2 = vmov 0   ;;  %s749_s0 = inlined_call_operand.vmem [shape: f32[128,16], index: 0, kind: input, shape index: {}]   ;;  %s750_s1 = inlined_call_operand.vmem [shape: f32[32,16], index: 1, kind: input, shape index: {}]   ;;  %s751_s2 = inlined_call_operand.vmem [shape: f32[32,1], index: 2, kind: input, shape index: {}]   ;;  %s752_s3 = inlined_call_operand.vmem [shape: f32[32,32], index: 3, kind: input, shape index: {}]   ;;  %s753_s4 = inlined_call_operand.vmem [shape: f32[32,1], index: 4, kind: input, shape index: {}]   ;;  %s754_s5 = inlined_call_operand.vmem [shape: f32[32,1], index: 5, kind: input, shape index: {}]   ;;  %s755_s6 = inlined_call_operand.<no memory space> [shape: f32[1], index: 6, kind: input, shape index: {}]   ;;  %s756_s7 = inlined_call_operand.hbm [shape: f32[1,128], index: 7, kind: output, shape index: {}]  }
   0x1   :  { %v43_v0 = vld [vmem:[%s749_s0 + $0x78] sm:$0xff]  ;;  %v42_v1 = vld [vmem:[%s749_s0 + $0x70] sm:$0xff]  ;;  %513 = vset.pattern.permute.xlu0 %v553_v2  ;;  %514 = vset.pattern.permute.xlu1 %v553_v2  ;;  %v41_v3 = vld [vmem:[%s749_s0 + $0x68] sm:$0xff] }
   0x2   :  { %459 = vmatprep.subr.msk.mxu0 %vm72_vm0, %v43_v0  ;;  %v44_v4 = vld [vmem:[%s750_s1] sm:$0xff]  ;;  %v51_v5 = vld [vmem:[%s751_s2 + $0x18] sm:$0xff]  ;;  %v49_v6 = vld [vmem:[%s751_s2 + $0x8] sm:$0xff] }
   0x3   :  { %460 = vmatpush3.xpose.msk.msra.mxu0 %vm72_vm0, %v43_v0  ;;  %491 = vmatprep.mubr.msk.f32.mxu0 %vm72_vm0, %v44_v4  ;;  %v40_v7 = vld [vmem:[%s749_s0 + $0x60] sm:$0xff]  ;;  %v50_v8 = vld [vmem:[%s751_s2 + $0x10] sm:$0xff] }
   0x4   :  { %461 = vmatprep.subr.msk.mxu0 %vm72_vm0, %v42_v1  ;;  %69 = vperm.xlu0 %513, %v51_v5   ;;  %v48_v9 = vld [vmem:[%s751_s2] sm:$0xff] }
   0x5   :  { %59 = vperm.xlu1 %514, %v49_v6  }
   0x7   :  { %462 = vmatpush3.xpose.msk.msra.mxu0 %vm72_vm0, %v42_v1 }
   0x8   :  { %463 = vmatprep.subr.msk.mxu0 %vm72_vm0, %v41_v3 }
   0xb   :  { %464 = vmatpush3.xpose.msk.msra.mxu0 %vm72_vm0, %v41_v3 }
   0xc   :  { %13 = vsyncpa [#allocation4], 0  ;;  %465 = vmatprep.subr.msk.mxu0 %vm72_vm0, %v40_v7  ;;  %64 = vperm.xlu0 %513, %v50_v8   ;;  %v39_v10 = vld [vmem:[%s749_s0 + $0x58] sm:$0xff]  ;;  %v226_v11 = vld [vmem:[%s753_s4] sm:$0xff]  ;;  %vm250_vm1 = vcmask 261120   ;;  %s554_s21 = smov [#allocation3]  }
   0xd   :  { %54 = vperm.xlu1 %514, %v48_v9   ;;  %v227_v12 = vld [vmem:[%s753_s4 + $0x8] sm:$0xff]  ;;  %v38_v13 = vld [vmem:[%s749_s0 + $0x50] sm:$0xff]  ;;  %v229_v15 = vld [vmem:[%s753_s4 + $0x18] sm:$0xff] }
   0xe   :  { %v228_v14 = vld [vmem:[%s753_s4 + $0x10] sm:$0xff]  ;;  %v37_v16 = vld [vmem:[%s749_s0 + $0x48] sm:$0xff]  ;;  %v352_v17 = vld [vmem:[%s754_s5] sm:$0xff] }
   0xf   :  { %466 = vmatpush3.xpose.msk.msra.mxu0 %vm72_vm0, %v40_v7  ;;  %v353_v18 = vld [vmem:[%s754_s5 + $0x8] sm:$0xff]  ;;  %v36_v19 = vld [vmem:[%s749_s0 + $0x40] sm:$0xff]  ;;  %v354_v20 = vld [vmem:[%s754_s5 + $0x10] sm:$0xff] }
  0x10   :  { %467 = vmatprep.subr.msk.mxu0 %vm72_vm0, %v39_v10  ;;  %232 = vperm.xlu0 %513, %v226_v11   ;;  %v355_v21 = vld [vmem:[%s754_s5 + $0x18] sm:$0xff]  ;;  %v34_v23 = vld [vmem:[%s749_s0 + $0x30] sm:$0xff]  ;;  %v33_v24 = vld [vmem:[%s749_s0 + $0x28] sm:$0xff]  ;;  %s399_s5 = sshll.u32 %s554_s21, 4  ;;  %s400_s5 = int_to_ptr.vmem [resolvable:$true] %s399_s5 }
  0x11   :  { %237 = vperm.xlu1 %514, %v227_v12   ;;  %v35_v22 = vld [vmem:[%s749_s0 + $0x38] sm:$0xff]  ;;  %v32_v25 = vld [vmem:[%s749_s0 + $0x20] sm:$0xff]  ;;  %v30_v27 = vld [vmem:[%s749_s0 + $0x10] sm:$0xff]  ;;  %s531_s22 = scalar_lea.vmem %s400_s5, 16  ;;  %s535_s23 = scalar_lea.vmem %s400_s5, 32 }
  0x12   :  { %v31_v26 = vld [vmem:[%s749_s0 + $0x18] sm:$0xff]  ;;  %v29_v28 = vld [vmem:[%s749_s0 + $0x8] sm:$0xff]  ;;  %v28_v29 = vld [vmem:[%s749_s0] sm:$0xff]  ;;  %p532_p0 = scmp.ne.s32.totalorder %s400_s5, %s531_s22  ;;  %p536_p1 = scmp.lt.s32.totalorder %s400_s5, %s400_s5 }
  0x13   :  { %468 = vmatpush3.xpose.msk.msra.mxu0 %vm72_vm0, %v39_v10  ;;  %v45_v30 = vld [vmem:[%s750_s1 + $0x8] sm:$0xff]  ;;  %v46_v31 = vld [vmem:[%s750_s1 + $0x10] sm:$0xff]  ;;  %v47_v32 = vld [vmem:[%s750_s1 + $0x18] sm:$0xff]  ;;  %p537_p2 = scmp.lt.s32.totalorder %s535_s23, %s531_s22 }
  0x14   :  { %469 = vmatprep.subr.msk.mxu0 %vm72_vm0, %v38_v13  ;;  %242 = vperm.xlu0 %513, %v228_v14   ;;  %v222_v33 = vld [vmem:[%s752_s3] sm:$0xff]  ;;  %v223_v50 = vld [vmem:[%s752_s3 + $0x8] sm:$0xff]  ;;  %v224_v51 = vld [vmem:[%s752_s3 + $0x10] sm:$0xff] }
  0x15   :  { %247 = vperm.xlu1 %514, %v229_v15   ;;  %505 = vmatprep.mubr.msk.f32.mxu1 %vm250_vm1, %v222_v33  ;;  %v225_v52 = vld [vmem:[%s752_s3 + $0x18] sm:$0xff]  ;;  %p538_p3 = por %p537_p2, %p536_p1 }
  0x17   :  { %470 = vmatpush3.xpose.msk.msra.mxu0 %vm72_vm0, %v38_v13  ;;  %p539_p4 = pnand %p538_p3, %p532_p0 }
  0x18   :  { %471 = vmatprep.subr.msk.mxu0 %vm72_vm0, %v37_v16  ;;  %358 = vperm.xlu0 %513, %v352_v17  }
  0x19   :  { %363 = vperm.xlu1 %514, %v353_v18  }
  0x1b   :  { %472 = vmatpush3.xpose.msk.msra.mxu0 %vm72_vm0, %v37_v16 }
  0x1c   :  { %473 = vmatprep.subr.msk.mxu0 %vm72_vm0, %v36_v19  ;;  %368 = vperm.xlu0 %513, %v354_v20  }
  0x1d   :  { %373 = vperm.xlu1 %514, %v355_v21   ;;  %v390_v21 = vstv %s755_s6 }
  0x1f   :  { %474 = vmatpush3.xpose.msk.msra.mxu0 %vm72_vm0, %v36_v19 }
  0x20   :  { %475 = vmatprep.subr.msk.mxu0 %vm72_vm0, %v35_v22 }
  0x23   :  { %476 = vmatpush3.xpose.msk.msra.mxu0 %vm72_vm0, %v35_v22 }
  0x24   :  { %477 = vmatprep.subr.msk.mxu0 %vm72_vm0, %v34_v23 }
  0x27   :  { %478 = vmatpush3.xpose.msk.msra.mxu0 %vm72_vm0, %v34_v23 }
  0x28   :  { %479 = vmatprep.subr.msk.mxu0 %vm72_vm0, %v33_v24 }
  0x2b   :  { %480 = vmatpush3.xpose.msk.msra.mxu0 %vm72_vm0, %v33_v24 }
  0x2c   :  { %481 = vmatprep.subr.msk.mxu0 %vm72_vm0, %v32_v25 }
  0x2f   :  { %482 = vmatpush3.xpose.msk.msra.mxu0 %vm72_vm0, %v32_v25 }
  0x30   :  { %483 = vmatprep.subr.msk.mxu0 %vm72_vm0, %v31_v26 }
  0x33   :  { %484 = vmatpush3.xpose.msk.msra.mxu0 %vm72_vm0, %v31_v26 }
  0x34   :  { %485 = vmatprep.subr.msk.mxu0 %vm72_vm0, %v30_v27 }
  0x37   :  { %486 = vmatpush3.xpose.msk.msra.mxu0 %vm72_vm0, %v30_v27 }
  0x38   :  { %487 = vmatprep.subr.msk.mxu0 %vm72_vm0, %v29_v28 }
  0x3b   :  { %488 = vmatpush3.xpose.msk.msra.mxu0 %vm72_vm0, %v29_v28 }
  0x3c   :  { %489 = vmatprep.subr.msk.mxu0 %vm72_vm0, %v28_v29 }
  0x3f   :  { %490 = vmatpush3.xpose.msk.msra.mxu0 %vm72_vm0, %v28_v29 }
  0x42   :  { %492 = vmatmul.mubr.msk.f32.vlgmr.msra.gmra.mxu0 %vm72_vm0, %v45_v30 }
  0x43   :  { %494 = vmatprep.mubr.msk.f32.mxu0 %vm72_vm0, %v46_v31 }
  0x46   :  { %495 = vmatmul.mubr.msk.f32.gmra.mxu0 %vm72_vm0, %v47_v32 }
  0x7f   :  { %v70_v34 = vpop.permute.xlu0 %69 }
  0x80   :  { %v60_v36 = vpop.permute.xlu1 %59 }
  0x87   :  { %v65_v40 = vpop.permute.xlu0 %64 }
  0x88   :  { %v55_v44 = vpop.permute.xlu1 %54 }
  0x8b   :  { %v233_v54 = vpop.permute.xlu0 %232 }
  0x8c   :  { %v238_v53 = vpop.permute.xlu1 %237 }
  0x8f   :  { %v243_v62 = vpop.permute.xlu0 %242 }
  0x90   :  { %v248_v59 = vpop.permute.xlu1 %247 }
  0x93   :  { %v359_v1 = vpop.permute.xlu0 %358 }
  0x94   :  { %v364_v4 = vpop.permute.xlu1 %363 }
  0x97   :  { %v369_v9 = vpop.permute.xlu0 %368 }
  0x98   :  { %v374_v12 = vpop.permute.xlu1 %373 }
 0x102   :  { %v493_v35 = vpop.f32.mrf.mxu0 }
 0x103   :  { %v205_v42 = vadd.f32 %v493_v35, %v60_v36 }
 0x104   :  { %v199_v37 = vpop.f32.mrf.mxu0 }
 0x105   :  { %v200_v45 = vadd.f32 %v199_v37, %v55_v44 }
 0x106   :  { %v496_v38 = vpop.f32.mrf.mxu0 }
 0x107   :  { %v215_v39 = vadd.f32 %v496_v38, %v70_v34 }
 0x108   :  { %v209_v41 = vpop.f32.mrf.mxu0 }
 0x109   :  { %515 = vtanh.f32 %v215_v39  ;;  %v210_v43 = vadd.f32 %v209_v41, %v65_v40 }
 0x10b   :  { %517 = vtanh.f32 %v210_v43 }
 0x10c   :  { %519 = vtanh.f32 %v205_v42 }
 0x10d   :  { %521 = vtanh.f32 %v200_v45 }
 0x116   :  { %v516_v46 = vpop.eup %515 }
 0x117   :  { %497 = vmatprep.subr.mxu1 %v516_v46 }
 0x118   :  { %v518_v47 = vpop.eup %517  ;;  %498 = vmatpush3.msra.mxu1 %v516_v46 }
 0x119   :  { %499 = vmatprep.subr.mxu1 %v518_v47  ;;  %v520_v48 = vpop.eup %519 }
 0x11a   :  { %500 = vmatpush3.msra.mxu1 %v518_v47  ;;  %v522_v49 = vpop.eup %521 }
 0x11b   :  { %501 = vmatprep.subr.mxu1 %v520_v48 }
 0x11c   :  { %502 = vmatpush3.msra.mxu1 %v520_v48 }
 0x11d   :  { %503 = vmatprep.subr.mxu1 %v522_v49 }
 0x11e   :  { %504 = vmatpush3.msra.mxu1 %v522_v49 }
 0x11f   :  { %506 = vmatmul.mubr.msk.f32.vlgmr.msra.gmra.mxu1 %vm250_vm1, %v223_v50 }
 0x120   :  { %508 = vmatprep.mubr.msk.f32.mxu1 %vm250_vm1, %v224_v51 }
 0x123   :  { %509 = vmatmul.mubr.msk.f32.gmra.mxu1 %vm250_vm1, %v225_v52 }
 0x1df   :  { %v507_v55 = vpop.f32.mrf.mxu1 }
 0x1e0   :  { %v335_v56 = vadd.f32 %v507_v55, %v238_v53 }
 0x1e1   :  { %v329_v57 = vpop.f32.mrf.mxu1 }
 0x1e2   :  { %v330_v58 = vadd.f32 %v329_v57, %v233_v54  ;;  %523 = vtanh.f32 %v335_v56 }
 0x1e3   :  { %v510_v60 = vpop.f32.mrf.mxu1 }
 0x1e4   :  { %525 = vtanh.f32 %v330_v58  ;;  %v345_v61 = vadd.f32 %v510_v60, %v248_v59 }
 0x1e5   :  { %v339_v63 = vpop.f32.mrf.mxu1 }
 0x1e6   :  { %v340_v0 = vadd.f32 %v339_v63, %v243_v62  ;;  %527 = vtanh.f32 %v345_v61 }
 0x1e8   :  { %529 = vtanh.f32 %v340_v0 }
 0x1ef   :  { %v524_v2 = vpop.eup %523 }
 0x1f0   :  { %v377_v7 = vmul.f32 %v524_v2, %v364_v4 }
 0x1f1   :  { %v526_v3 = vpop.eup %525 }
 0x1f2   :  { %v376_v5 = vmul.f32 %v526_v3, %v359_v1 }
 0x1f3   :  { %v528_v6 = vpop.eup %527 }
 0x1f4   :  { %v380_v11 = vadd.f32 %v377_v7, %v376_v5  ;;  %v379_v13 = vmul.f32 %v528_v6, %v374_v12 }
 0x1f5   :  { %v530_v8 = vpop.eup %529 }
 0x1f6   :  { %v378_v10 = vmul.f32 %v530_v8, %v369_v9 }
 0x1f8   :  { %v381_v14 = vadd.f32 %v380_v11, %v378_v10 }
 0x1fa   :  { %v382_v15 = vadd.f32 %v381_v14, %v379_v13 }
 0x1fc   :  { %v383_v16 = vrot.slane %v382_v15, 4 }
 0x1fe   :  { %v384_v17 = vadd.f32 %v383_v16, %v382_v15 }
 0x200   :  { %v385_v18 = vrot.slane %v384_v17, 2 }
 0x202   :  { %v386_v19 = vadd.f32 %v385_v18, %v384_v17 }
 0x204   :  { %v387_v20 = vrot.slane %v386_v19, 1 }
 0x206   :  { %v388_v22 = vadd.f32 %v387_v20, %v386_v19 }
 0x208   :  { %v391_v23 = vadd.f32 %v390_v21, %v388_v22 }
 0x20a   :  { %392 = vst [vmem:[#allocation3] sm:$0x1] %v391_v23 }
 0x20b   :  { %542 = shalt.err (!%p539_p4)
}
 0x20c   :  { %402 = dma.vmem_to_hbm [thread:$0]  %s400_s5, 16, %s756_s7, [#allocation4]  }
 0x20d   :  { %551 = dma.done.wait [#allocation4], 16  }
 0x20e   :  { %552 = vsyncadd [#allocation4], 4294967280 }
 0x20f   :  { %406 = vsyncpa [#allocation4], 1 }

</bundles_post_ra>
